<compile_context>
chip_gen: v5e
topology: v5e:2x2
jax: 0.10.0
libtpu: 0.0.40
codegen_flags: <defaults>
</compile_context>

<pallas_src>
import jax
import jax.numpy as jnp
from jax.experimental import pallas as pl
from jax.experimental.pallas import tpu as pltpu

NUM_INPUTS = 1250
NUM_L2 = 100
NUM_L3 = 100
NUM_OUTPUTS = 3

# Default batch-tile size: multiple of 256 (v6e/v7x MXU) and 128 (v5e MXU),
# large enough to amortize the ~0.35 us per-grid-step overhead.
DEFAULT_BLOCK_B = 1024


def _mlp_kernel(x_ref, w1_ref, b1_ref, w2_ref, b2_ref, w3_ref, b3_ref, o_ref):
    # One batch tile per grid step; all weights/biases are VMEM-resident.
    # Cast the streamed x tile to the weight (compute) dtype in-kernel — this is
    # hidden under the x DMA and avoids a wrapper-side HBM copy of x.
    x = x_ref[...].astype(w1_ref.dtype)

    a2 = jnp.dot(x, w1_ref[...], preferred_element_type=jnp.float32) + b1_ref[...]
    a2 = jnp.maximum(a2, 0.0).astype(w2_ref.dtype)

    a3 = jnp.dot(a2, w2_ref[...], preferred_element_type=jnp.float32) + b2_ref[...]
    a3 = jnp.maximum(a3, 0.0).astype(w3_ref.dtype)

    y = jnp.dot(a3, w3_ref[...], preferred_element_type=jnp.float32) + b3_ref[...]
    o_ref[...] = y.astype(o_ref.dtype)


def _round_up(n, m):
    return ((n + m - 1) // m) * m


def _choose_tile(batch, block_b):
    """Pick the batch-tile size tb (multiple of 8; <= block_b)."""
    if batch <= 512:
        # Small batch: one tile, rounded to a multiple of 16 (bf16 sublane
        # packing).  The (possibly) ragged block is clipped by Pallas.
        return min(block_b, max(16, _round_up(batch, 16)))
    # Larger batches: cap at block_b but prefer >=2 tiles so v7x's second
    # TensorCore gets work; 256-align for clean MXU / DMA shapes.
    return min(block_b, _round_up(pl.cdiv(batch, 2), 256))


def mlp_forward(x, params, *, block_b=DEFAULT_BLOCK_B, compute_dtype=jnp.bfloat16):
    w1, b1, w2, b2, w3, b3 = params
    B, K = x.shape
    assert K == NUM_INPUTS

    tb = _choose_tile(B, block_b)
    grid = (pl.cdiv(B, tb),)

    # Weights are tiny; cast them once in the wrapper.  Biases stay f32 and are
    # added after the f32 accumulation.  x is passed through untouched (its
    # per-tile cast happens inside the kernel).
    w1c = w1.astype(compute_dtype)
    w2c = w2.astype(compute_dtype)
    w3c = w3.astype(compute_dtype)

    # Weights/biases: full-array blocks with a constant index_map -> loaded into
    # VMEM once and reused across every batch tile.
    def resident(shape):
        return pl.BlockSpec(shape, lambda i: (0,) * len(shape))

    out = pl.pallas_call(
        _mlp_kernel,
        out_shape=jax.ShapeDtypeStruct((B, NUM_OUTPUTS), jnp.float32),
        grid=grid,
        in_specs=[
            pl.BlockSpec((tb, NUM_INPUTS), lambda i: (i, 0)),  # streamed x tiles
            resident(w1c.shape),
            resident(b1.shape),
            resident(w2c.shape),
            resident(b2.shape),
            resident(w3c.shape),
            resident(b3.shape),
        ],
        out_specs=pl.BlockSpec((tb, NUM_OUTPUTS), lambda i: (i, 0)),
        compiler_params=pltpu.CompilerParams(
            dimension_semantics=("parallel",),   # 2-TC sharding on v7x
            vmem_limit_bytes=40 * 1024 * 1024,   # f32 x double-buffer @ TB=1024
        ),
    )(x, w1c, b1, w2c, b2, w3c, b3)

    return out


def init_params(key):
    # PyTorch-like uniform(-1/sqrt(fan_in), 1/sqrt(fan_in)) init, stored (in, out).
    def linear(key, fan_in, fan_out):
        kw, kb = jax.random.split(key)
        bound = 1.0 / jnp.sqrt(fan_in)
        w = jax.random.uniform(kw, (fan_in, fan_out), jnp.float32, -bound, bound)
        b = jax.random.uniform(kb, (1, fan_out), jnp.float32, -bound, bound)
        return w, b

    k1, k2, k3 = jax.random.split(key, 3)
    w1, b1 = linear(k1, NUM_INPUTS, NUM_L2)
    w2, b2 = linear(k2, NUM_L2, NUM_L3)
    w3, b3 = linear(k3, NUM_L3, NUM_OUTPUTS)
    return (w1, b1, w2, b2, w3, b3)


def reference_forward(x, params):
    w1, b1, w2, b2, w3, b3 = params
    a2 = jnp.maximum(x @ w1 + b1, 0.0)
    a3 = jnp.maximum(a2 @ w2 + b2, 0.0)
    return a3 @ w3 + b3


if __name__ == "__main__":
    key = jax.random.PRNGKey(0)
    kx, kp, kx2 = jax.random.split(key, 3)
    params = init_params(kp)

    # Small batch: single (ragged) tile.
    B = 8
    x = jax.random.normal(kx, (B, NUM_INPUTS), dtype=jnp.float32)
    y_ref = reference_forward(x, params)

    # Exact f32 path — tight tolerance.
    y_f32 = jax.block_until_ready(mlp_forward(x, params, compute_dtype=jnp.float32))
    assert y_f32.shape == (B, NUM_OUTPUTS)
    assert jnp.allclose(y_f32, y_ref, atol=1e-4, rtol=1e-4)

    # Default bf16 compute path — looser tolerance (bf16 mantissa over a
    # 1250-long contraction).
    y_bf16 = jax.block_until_ready(mlp_forward(x, params))
    assert y_bf16.shape == (B, NUM_OUTPUTS)
    assert jnp.allclose(y_bf16, y_ref, atol=5e-2, rtol=5e-2)

    # Larger batch: exercises the multi-tile grid + clipped last block path.
    B2 = 600
    x2 = jax.random.normal(kx2, (B2, NUM_INPUTS), dtype=jnp.float32)
    y2_ref = reference_forward(x2, params)
    y2 = jax.block_until_ready(mlp_forward(x2, params, compute_dtype=jnp.float32))
    assert y2.shape == (B2, NUM_OUTPUTS)
    assert jnp.allclose(y2, y2_ref, atol=1e-4, rtol=1e-4)

    print("KERNEL_OK")
</pallas_src>

<mosaic_0001>
module attributes {stable_mosaic.version = 11 : i64} {
  func.func @_mlp_kernel(%arg0: i32, %arg1: memref<16x1250xf32, #tpu.memory_space<vmem>>, %arg2: memref<1250x100xf32, #tpu.memory_space<vmem>>, %arg3: memref<1x100xf32, #tpu.memory_space<vmem>>, %arg4: memref<100x100xf32, #tpu.memory_space<vmem>>, %arg5: memref<1x100xf32, #tpu.memory_space<vmem>>, %arg6: memref<100x3xf32, #tpu.memory_space<vmem>>, %arg7: memref<1x3xf32, #tpu.memory_space<vmem>>, %arg8: memref<16x3xf32, #tpu.memory_space<vmem>>) attributes {dimension_semantics = [#tpu.dimension_semantics<parallel>], iteration_bounds = array<i64: 1>, scalar_prefetch = 0 : i64, scratch_operands = 0 : i64, tpu.core_type = #tpu.core_type<tc>, window_params = [{transform_indices = @transform_0, window_bounds = array<i64: 16, 1250>}, {pipeline_mode = #tpu.pipeline_mode<synchronous>, transform_indices = @transform_1, window_bounds = array<i64: 1250, 100>}, {pipeline_mode = #tpu.pipeline_mode<synchronous>, transform_indices = @transform_2, window_bounds = array<i64: 1, 100>}, {pipeline_mode = #tpu.pipeline_mode<synchronous>, transform_indices = @transform_3, window_bounds = array<i64: 100, 100>}, {pipeline_mode = #tpu.pipeline_mode<synchronous>, transform_indices = @transform_4, window_bounds = array<i64: 1, 100>}, {pipeline_mode = #tpu.pipeline_mode<synchronous>, transform_indices = @transform_5, window_bounds = array<i64: 100, 3>}, {pipeline_mode = #tpu.pipeline_mode<synchronous>, transform_indices = @transform_6, window_bounds = array<i64: 1, 3>}, {transform_indices = @transform_7, window_bounds = array<i64: 16, 3>}]} {
    %c0 = arith.constant 0 : index
    %c0_0 = arith.constant 0 : index
    %0 = vector.load %arg1[%c0, %c0_0] : memref<16x1250xf32, #tpu.memory_space<vmem>>, vector<16x1250xf32>
    %c0_1 = arith.constant 0 : index
    %c0_2 = arith.constant 0 : index
    %1 = vector.load %arg2[%c0_1, %c0_2] : memref<1250x100xf32, #tpu.memory_space<vmem>>, vector<1250x100xf32>
    %cst = arith.constant dense<0.000000e+00> : vector<16x100xf32>
    %2 = tpu.matmul %0, %1, %cst {dimension_numbers = #tpu.dot_dimension_numbers<[1], [0], [0], [1], [0, 0, 1, 1], [], []>} : vector<16x1250xf32>, vector<1250x100xf32>, vector<16x100xf32> -> vector<16x100xf32>
    %c0_3 = arith.constant 0 : index
    %c0_4 = arith.constant 0 : index
    %3 = vector.load %arg3[%c0_3, %c0_4] : memref<1x100xf32, #tpu.memory_space<vmem>>, vector<1x100xf32>
    %4 = vector.broadcast %3 : vector<1x100xf32> to vector<16x100xf32>
    %5 = arith.addf %2, %4 : vector<16x100xf32>
    %cst_5 = arith.constant 0.000000e+00 : f32
    %6 = vector.broadcast %cst_5 : f32 to vector<16x100xf32>
    %7 = arith.maximumf %5, %6 : vector<16x100xf32>
    %c0_6 = arith.constant 0 : index
    %c0_7 = arith.constant 0 : index
    %8 = vector.load %arg4[%c0_6, %c0_7] : memref<100x100xf32, #tpu.memory_space<vmem>>, vector<100x100xf32>
    %cst_8 = arith.constant dense<0.000000e+00> : vector<16x100xf32>
    %9 = tpu.matmul %7, %8, %cst_8 {dimension_numbers = #tpu.dot_dimension_numbers<[1], [0], [0], [1], [0, 0, 1, 1], [], []>} : vector<16x100xf32>, vector<100x100xf32>, vector<16x100xf32> -> vector<16x100xf32>
    %c0_9 = arith.constant 0 : index
    %c0_10 = arith.constant 0 : index
    %10 = vector.load %arg5[%c0_9, %c0_10] : memref<1x100xf32, #tpu.memory_space<vmem>>, vector<1x100xf32>
    %11 = vector.broadcast %10 : vector<1x100xf32> to vector<16x100xf32>
    %12 = arith.addf %9, %11 : vector<16x100xf32>
    %cst_11 = arith.constant 0.000000e+00 : f32
    %13 = vector.broadcast %cst_11 : f32 to vector<16x100xf32>
    %14 = arith.maximumf %12, %13 : vector<16x100xf32>
    %c0_12 = arith.constant 0 : index
    %c0_13 = arith.constant 0 : index
    %15 = vector.load %arg6[%c0_12, %c0_13] : memref<100x3xf32, #tpu.memory_space<vmem>>, vector<100x3xf32>
    %cst_14 = arith.constant dense<0.000000e+00> : vector<16x3xf32>
    %16 = tpu.matmul %14, %15, %cst_14 {dimension_numbers = #tpu.dot_dimension_numbers<[1], [0], [0], [1], [0, 0, 1, 1], [], []>} : vector<16x100xf32>, vector<100x3xf32>, vector<16x3xf32> -> vector<16x3xf32>
    %c0_15 = arith.constant 0 : index
    %c0_16 = arith.constant 0 : index
    %17 = vector.load %arg7[%c0_15, %c0_16] : memref<1x3xf32, #tpu.memory_space<vmem>>, vector<1x3xf32>
    %18 = vector.broadcast %17 : vector<1x3xf32> to vector<16x3xf32>
    %19 = arith.addf %16, %18 : vector<16x3xf32>
    %c0_17 = arith.constant 0 : index
    %c0_18 = arith.constant 0 : index
    %20 = vector.load %arg8[%c0_17, %c0_18] : memref<16x3xf32, #tpu.memory_space<vmem>>, vector<16x3xf32>
    tpu.vector_store %arg8[%c0_17, %c0_18], %19 {strides = array<i32>} : memref<16x3xf32, #tpu.memory_space<vmem>>, vector<16x3xf32>,
    return
  }
  func.func @transform_0(%arg0: i32) -> (i32, i32) {
    %c0_i32 = arith.constant 0 : i32
    %c0_i32_0 = arith.constant 0 : i32
    return %arg0, %c0_i32 : i32, i32
  }
  func.func @transform_1(%arg0: i32) -> (i32, i32) {
    %c0_i32 = arith.constant 0 : i32
    %c0_i32_0 = arith.constant 0 : i32
    %c0_i32_1 = arith.constant 0 : i32
    return %c0_i32, %c0_i32_0 : i32, i32
  }
  func.func @transform_2(%arg0: i32) -> (i32, i32) {
    %c0_i32 = arith.constant 0 : i32
    %c0_i32_0 = arith.constant 0 : i32
    %c0_i32_1 = arith.constant 0 : i32
    return %c0_i32, %c0_i32_0 : i32, i32
  }
  func.func @transform_3(%arg0: i32) -> (i32, i32) {
    %c0_i32 = arith.constant 0 : i32
    %c0_i32_0 = arith.constant 0 : i32
    %c0_i32_1 = arith.constant 0 : i32
    return %c0_i32, %c0_i32_0 : i32, i32
  }
  func.func @transform_4(%arg0: i32) -> (i32, i32) {
    %c0_i32 = arith.constant 0 : i32
    %c0_i32_0 = arith.constant 0 : i32
    %c0_i32_1 = arith.constant 0 : i32
    return %c0_i32, %c0_i32_0 : i32, i32
  }
  func.func @transform_5(%arg0: i32) -> (i32, i32) {
    %c0_i32 = arith.constant 0 : i32
    %c0_i32_0 = arith.constant 0 : i32
    %c0_i32_1 = arith.constant 0 : i32
    return %c0_i32, %c0_i32_0 : i32, i32
  }
  func.func @transform_6(%arg0: i32) -> (i32, i32) {
    %c0_i32 = arith.constant 0 : i32
    %c0_i32_0 = arith.constant 0 : i32
    %c0_i32_1 = arith.constant 0 : i32
    return %c0_i32, %c0_i32_0 : i32, i32
  }
  func.func @transform_7(%arg0: i32) -> (i32, i32) {
    %c0_i32 = arith.constant 0 : i32
    %c0_i32_0 = arith.constant 0 : i32
    return %arg0, %c0_i32 : i32, i32
  }
}

</mosaic_0001>

<bundles_post_ra>
// kernel: tpu_custom_call.1
= control target key start
LH: loop header
LB: loop body
LE: loop exit
PB: predicated region body
PF: predicated region fallthrough
CT: control target
= control target key end

     0   :  { %vm214_vm0 = vcmask 1041408   ;;  %vm207_vm1 = vcmask 801792   ;;  %vm474_vm2 = vcmask 1043456   ;;  %vm467_vm3 = vcmask 818176   ;;  %s1275_s0 = inlined_call_operand.vmem [shape: f32[8,1250], index: 0, kind: input, shape index: {}]   ;;  %s1276_s1 = inlined_call_operand.vmem [shape: f32[1250,100], index: 1, kind: input, shape index: {}]   ;;  %s1277_s2 = inlined_call_operand.vmem [shape: f32[1,100], index: 2, kind: input, shape index: {}]   ;;  %s1278_s3 = inlined_call_operand.vmem [shape: f32[100,100], index: 3, kind: input, shape index: {}]   ;;  %s1279_s4 = inlined_call_operand.vmem [shape: f32[1,100], index: 4, kind: input, shape index: {}]   ;;  %s1280_s5 = inlined_call_operand.vmem [shape: f32[100,3], index: 5, kind: input, shape index: {}]   ;;  %s1281_s6 = inlined_call_operand.vmem [shape: f32[1,3], index: 6, kind: input, shape index: {}]   ;;  %s1282_s7 = inlined_call_operand.vmem [shape: f32[8,3], index: 7, kind: output, shape index: {}]  }
   0x1   :  { %v61_v0 = vld [vmem:[%s1276_s1 + $0x78] sm:$0xff]  ;;  %v60_v1 = vld [vmem:[%s1276_s1 + $0x70] sm:$0xff]  ;;  %v59_v4 = vld [vmem:[%s1276_s1 + $0x68] sm:$0xff]  ;;  %vm552_vm4 = vcmask 23552  }
   0x2   :  { %218 = vmatpush.msra.mxu0 %v61_v0  ;;  %v93_v2 = vld [vmem:[%s1276_s1 + $0x178] sm:$0xff]  ;;  %v92_v3 = vld [vmem:[%s1276_s1 + $0x170] sm:$0xff]  ;;  %v91_v7 = vld [vmem:[%s1276_s1 + $0x168] sm:$0xff] }
   0x3   :  { %264 = vmatpush.msra.mxu2 %v93_v2  ;;  %v109_v5 = vld [vmem:[%s1276_s1 + $0x1f8] sm:$0xff]  ;;  %v108_v8 = vld [vmem:[%s1276_s1 + $0x1f0] sm:$0xff]  ;;  %v58_v9 = vld [vmem:[%s1276_s1 + $0x60] sm:$0xff] }
   0x4   :  { %v77_v6 = vld [vmem:[%s1276_s1 + $0xf8] sm:$0xff]  ;;  %219 = vmatpush.msra.mxu0 %v60_v1  ;;  %287 = vmatpush.msra.mxu3 %v109_v5  ;;  %v76_v10 = vld [vmem:[%s1276_s1 + $0xf0] sm:$0xff]  ;;  %v107_v11 = vld [vmem:[%s1276_s1 + $0x1e8] sm:$0xff] }
   0x5   :  { %265 = vmatpush.msra.mxu2 %v92_v3  ;;  %241 = vmatpush.msra.mxu1 %v77_v6  ;;  %v90_v12 = vld [vmem:[%s1276_s1 + $0x160] sm:$0xff]  ;;  %v75_v13 = vld [vmem:[%s1276_s1 + $0xe8] sm:$0xff]  ;;  %v57_v14 = vld [vmem:[%s1276_s1 + $0x58] sm:$0xff] }
   0x6   :  { %220 = vmatpush.msra.mxu0 %v59_v4  ;;  %288 = vmatpush.msra.mxu3 %v108_v8  ;;  %v106_v15 = vld [vmem:[%s1276_s1 + $0x1e0] sm:$0xff]  ;;  %v89_v16 = vld [vmem:[%s1276_s1 + $0x158] sm:$0xff]  ;;  %v56_v18 = vld [vmem:[%s1276_s1 + $0x50] sm:$0xff] }
   0x7   :  { %266 = vmatpush.msra.mxu2 %v91_v7  ;;  %242 = vmatpush.msra.mxu1 %v76_v10  ;;  %v74_v17 = vld [vmem:[%s1276_s1 + $0xe0] sm:$0xff]  ;;  %v105_v19 = vld [vmem:[%s1276_s1 + $0x1d8] sm:$0xff]  ;;  %v88_v20 = vld [vmem:[%s1276_s1 + $0x150] sm:$0xff] }
   0x8   :  { %221 = vmatpush.msra.mxu0 %v58_v9  ;;  %289 = vmatpush.msra.mxu3 %v107_v11  ;;  %v73_v21 = vld [vmem:[%s1276_s1 + $0xd8] sm:$0xff]  ;;  %v55_v22 = vld [vmem:[%s1276_s1 + $0x48] sm:$0xff]  ;;  %v104_v23 = vld [vmem:[%s1276_s1 + $0x1d0] sm:$0xff] }
   0x9   :  { %267 = vmatpush.msra.mxu2 %v90_v12  ;;  %243 = vmatpush.msra.mxu1 %v75_v13  ;;  %v87_v24 = vld [vmem:[%s1276_s1 + $0x148] sm:$0xff]  ;;  %v72_v25 = vld [vmem:[%s1276_s1 + $0xd0] sm:$0xff]  ;;  %v54_v26 = vld [vmem:[%s1276_s1 + $0x40] sm:$0xff] }
   0xa   :  { %222 = vmatpush.msra.mxu0 %v57_v14  ;;  %290 = vmatpush.msra.mxu3 %v106_v15  ;;  %v103_v27 = vld [vmem:[%s1276_s1 + $0x1c8] sm:$0xff]  ;;  %v86_v28 = vld [vmem:[%s1276_s1 + $0x140] sm:$0xff]  ;;  %v53_v30 = vld [vmem:[%s1276_s1 + $0x38] sm:$0xff] }
   0xb   :  { %268 = vmatpush.msra.mxu2 %v89_v16  ;;  %244 = vmatpush.msra.mxu1 %v74_v17  ;;  %v71_v29 = vld [vmem:[%s1276_s1 + $0xc8] sm:$0xff]  ;;  %v102_v31 = vld [vmem:[%s1276_s1 + $0x1c0] sm:$0xff]  ;;  %v85_v32 = vld [vmem:[%s1276_s1 + $0x138] sm:$0xff] }
   0xc   :  { %223 = vmatpush.msra.mxu0 %v56_v18  ;;  %291 = vmatpush.msra.mxu3 %v105_v19  ;;  %v70_v33 = vld [vmem:[%s1276_s1 + $0xc0] sm:$0xff]  ;;  %v52_v34 = vld [vmem:[%s1276_s1 + $0x30] sm:$0xff]  ;;  %v101_v35 = vld [vmem:[%s1276_s1 + $0x1b8] sm:$0xff] }
   0xd   :  { %269 = vmatpush.msra.mxu2 %v88_v20  ;;  %245 = vmatpush.msra.mxu1 %v73_v21  ;;  %v84_v36 = vld [vmem:[%s1276_s1 + $0x130] sm:$0xff]  ;;  %v69_v37 = vld [vmem:[%s1276_s1 + $0xb8] sm:$0xff]  ;;  %v51_v38 = vld [vmem:[%s1276_s1 + $0x28] sm:$0xff] }
   0xe   :  { %224 = vmatpush.msra.mxu0 %v55_v22  ;;  %292 = vmatpush.msra.mxu3 %v104_v23  ;;  %v100_v39 = vld [vmem:[%s1276_s1 + $0x1b0] sm:$0xff]  ;;  %v83_v40 = vld [vmem:[%s1276_s1 + $0x128] sm:$0xff]  ;;  %v50_v42 = vld [vmem:[%s1276_s1 + $0x20] sm:$0xff] }
   0xf   :  { %270 = vmatpush.msra.mxu2 %v87_v24  ;;  %246 = vmatpush.msra.mxu1 %v72_v25  ;;  %v68_v41 = vld [vmem:[%s1276_s1 + $0xb0] sm:$0xff]  ;;  %v99_v43 = vld [vmem:[%s1276_s1 + $0x1a8] sm:$0xff]  ;;  %v82_v44 = vld [vmem:[%s1276_s1 + $0x120] sm:$0xff] }
  0x10   :  { %225 = vmatpush.msra.mxu0 %v54_v26  ;;  %293 = vmatpush.msra.mxu3 %v103_v27  ;;  %v67_v45 = vld [vmem:[%s1276_s1 + $0xa8] sm:$0xff]  ;;  %v49_v46 = vld [vmem:[%s1276_s1 + $0x18] sm:$0xff]  ;;  %v98_v47 = vld [vmem:[%s1276_s1 + $0x1a0] sm:$0xff] }
  0x11   :  { %271 = vmatpush.msra.mxu2 %v86_v28  ;;  %247 = vmatpush.msra.mxu1 %v71_v29  ;;  %v81_v48 = vld [vmem:[%s1276_s1 + $0x118] sm:$0xff]  ;;  %v66_v49 = vld [vmem:[%s1276_s1 + $0xa0] sm:$0xff]  ;;  %v48_v50 = vld [vmem:[%s1276_s1 + $0x10] sm:$0xff] }
  0x12   :  { %226 = vmatpush.msra.mxu0 %v53_v30  ;;  %294 = vmatpush.msra.mxu3 %v102_v31  ;;  %v97_v51 = vld [vmem:[%s1276_s1 + $0x198] sm:$0xff]  ;;  %v80_v52 = vld [vmem:[%s1276_s1 + $0x110] sm:$0xff]  ;;  %v47_v54 = vld [vmem:[%s1276_s1 + $0x8] sm:$0xff] }
  0x13   :  { %272 = vmatpush.msra.mxu2 %v85_v32  ;;  %248 = vmatpush.msra.mxu1 %v70_v33  ;;  %v65_v53 = vld [vmem:[%s1276_s1 + $0x98] sm:$0xff]  ;;  %v96_v55 = vld [vmem:[%s1276_s1 + $0x190] sm:$0xff]  ;;  %v79_v56 = vld [vmem:[%s1276_s1 + $0x108] sm:$0xff] }
  0x14   :  { %227 = vmatpush.msra.mxu0 %v52_v34  ;;  %295 = vmatpush.msra.mxu3 %v101_v35  ;;  %v64_v57 = vld [vmem:[%s1276_s1 + $0x90] sm:$0xff]  ;;  %v46_v58 = vld [vmem:[%s1276_s1] sm:$0xff]  ;;  %v95_v59 = vld [vmem:[%s1276_s1 + $0x188] sm:$0xff] }
  0x15   :  { %273 = vmatpush.msra.mxu2 %v84_v36  ;;  %249 = vmatpush.msra.mxu1 %v69_v37  ;;  %v125_v60 = vld [vmem:[%s1276_s1 + $0x278] sm:$0xff]  ;;  %v78_v61 = vld [vmem:[%s1276_s1 + $0x100] sm:$0xff]  ;;  %v63_v62 = vld [vmem:[%s1276_s1 + $0x88] sm:$0xff] }
  0x16   :  { %228 = vmatpush.msra.mxu0 %v51_v38  ;;  %296 = vmatpush.msra.mxu3 %v100_v39  ;;  %v157_v63 = vld [vmem:[%s1276_s1 + $0x378] sm:$0xff]  ;;  %v124_v0 = vld [vmem:[%s1276_s1 + $0x270] sm:$0xff]  ;;  %v94_v1 = vld [vmem:[%s1276_s1 + $0x180] sm:$0xff] }
  0x17   :  { %274 = vmatpush.msra.mxu2 %v83_v40  ;;  %250 = vmatpush.msra.mxu1 %v68_v41  ;;  %v62_v2 = vld [vmem:[%s1276_s1 + $0x80] sm:$0xff]  ;;  %v156_v3 = vld [vmem:[%s1276_s1 + $0x370] sm:$0xff]  ;;  %v123_v4 = vld [vmem:[%s1276_s1 + $0x268] sm:$0xff] }
  0x18   :  { %229 = vmatpush.msra.mxu0 %v50_v42  ;;  %297 = vmatpush.msra.mxu3 %v99_v43  ;;  %v173_v5 = vld [vmem:[%s1276_s1 + $0x3f8] sm:$0xff]  ;;  %v155_v7 = vld [vmem:[%s1276_s1 + $0x368] sm:$0xff]  ;;  %v122_v8 = vld [vmem:[%s1276_s1 + $0x260] sm:$0xff] }
  0x19   :  { %275 = vmatpush.msra.mxu2 %v82_v44  ;;  %251 = vmatpush.msra.mxu1 %v67_v45  ;;  %v141_v6 = vld [vmem:[%s1276_s1 + $0x2f8] sm:$0xff]  ;;  %v172_v9 = vld [vmem:[%s1276_s1 + $0x3f0] sm:$0xff]  ;;  %v154_v11 = vld [vmem:[%s1276_s1 + $0x360] sm:$0xff] }
  0x1a   :  { %230 = vmatpush.msra.mxu0 %v49_v46  ;;  %298 = vmatpush.msra.mxu3 %v98_v47  ;;  %v140_v10 = vld [vmem:[%s1276_s1 + $0x2f0] sm:$0xff]  ;;  %v121_v12 = vld [vmem:[%s1276_s1 + $0x258] sm:$0xff]  ;;  %v171_v13 = vld [vmem:[%s1276_s1 + $0x3e8] sm:$0xff] }
  0x1b   :  { %276 = vmatpush.msra.mxu2 %v81_v48  ;;  %252 = vmatpush.msra.mxu1 %v66_v49  ;;  %v139_v14 = vld [vmem:[%s1276_s1 + $0x2e8] sm:$0xff]  ;;  %v153_v15 = vld [vmem:[%s1276_s1 + $0x358] sm:$0xff]  ;;  %v120_v16 = vld [vmem:[%s1276_s1 + $0x250] sm:$0xff] }
  0x1c   :  { %231 = vmatpush.msra.mxu0 %v48_v50  ;;  %299 = vmatpush.msra.mxu3 %v97_v51  ;;  %v170_v17 = vld [vmem:[%s1276_s1 + $0x3e0] sm:$0xff]  ;;  %v152_v19 = vld [vmem:[%s1276_s1 + $0x350] sm:$0xff]  ;;  %v119_v20 = vld [vmem:[%s1276_s1 + $0x248] sm:$0xff] }
  0x1d   :  { %277 = vmatpush.msra.mxu2 %v80_v52  ;;  %253 = vmatpush.msra.mxu1 %v65_v53  ;;  %v138_v18 = vld [vmem:[%s1276_s1 + $0x2e0] sm:$0xff]  ;;  %v169_v21 = vld [vmem:[%s1276_s1 + $0x3d8] sm:$0xff]  ;;  %v151_v23 = vld [vmem:[%s1276_s1 + $0x348] sm:$0xff] }
  0x1e   :  { %232 = vmatpush.msra.mxu0 %v47_v54  ;;  %300 = vmatpush.msra.mxu3 %v96_v55  ;;  %v137_v22 = vld [vmem:[%s1276_s1 + $0x2d8] sm:$0xff]  ;;  %v118_v24 = vld [vmem:[%s1276_s1 + $0x240] sm:$0xff]  ;;  %v168_v25 = vld [vmem:[%s1276_s1 + $0x3d0] sm:$0xff] }
  0x1f   :  { %278 = vmatpush.msra.mxu2 %v79_v56  ;;  %254 = vmatpush.msra.mxu1 %v64_v57  ;;  %v136_v26 = vld [vmem:[%s1276_s1 + $0x2d0] sm:$0xff]  ;;  %v150_v27 = vld [vmem:[%s1276_s1 + $0x340] sm:$0xff]  ;;  %v117_v28 = vld [vmem:[%s1276_s1 + $0x238] sm:$0xff] }
  0x20   :  { %233 = vmatpush.msra.mxu0 %v46_v58  ;;  %301 = vmatpush.msra.mxu3 %v95_v59  ;;  %v167_v29 = vld [vmem:[%s1276_s1 + $0x3c8] sm:$0xff]  ;;  %v28_v30 = vld [vmem:[%s1275_s0 + $0x10] sm:$0xff]  ;;  %v149_v33 = vld [vmem:[%s1276_s1 + $0x338] sm:$0xff] }
  0x21   :  { %279 = vmatpush.msra.mxu2 %v78_v61  ;;  %255 = vmatpush.msra.mxu1 %v63_v62  ;;  %v135_v31 = vld [vmem:[%s1276_s1 + $0x2c8] sm:$0xff]  ;;  %v116_v32 = vld [vmem:[%s1276_s1 + $0x230] sm:$0xff]  ;;  %v166_v34 = vld [vmem:[%s1276_s1 + $0x3c0] sm:$0xff] }
  0x22   :  { %310 = vmatpush.msrb.mxu0 %v125_v60  ;;  %302 = vmatpush.msra.mxu3 %v94_v1  ;;  %v26_v35 = vld [vmem:[%s1275_s0] sm:$0xff]  ;;  %v115_v36 = vld [vmem:[%s1276_s1 + $0x228] sm:$0xff]  ;;  %v29_v37 = vld [vmem:[%s1275_s0 + $0x18] sm:$0xff] }
  0x23   :  { %356 = vmatpush.msrb.mxu2 %v157_v63  ;;  %256 = vmatpush.msra.mxu1 %v62_v2  ;;  %v134_v38 = vld [vmem:[%s1276_s1 + $0x2c0] sm:$0xff]  ;;  %v148_v39 = vld [vmem:[%s1276_s1 + $0x330] sm:$0xff]  ;;  %v165_v41 = vld [vmem:[%s1276_s1 + $0x3b8] sm:$0xff] }
  0x24   :  { %311 = vmatpush.msrb.mxu0 %v124_v0  ;;  %379 = vmatpush.msrb.mxu3 %v173_v5  ;;  %v114_v40 = vld [vmem:[%s1276_s1 + $0x220] sm:$0xff]  ;;  %v27_v42 = vld [vmem:[%s1275_s0 + $0x8] sm:$0xff]  ;;  %v113_v44 = vld [vmem:[%s1276_s1 + $0x218] sm:$0xff] }
  0x25   :  { %357 = vmatpush.msrb.mxu2 %v156_v3  ;;  %333 = vmatpush.msrb.mxu1 %v141_v6  ;;  %v147_v43 = vld [vmem:[%s1276_s1 + $0x328] sm:$0xff]  ;;  %v133_v45 = vld [vmem:[%s1276_s1 + $0x2b8] sm:$0xff]  ;;  %v164_v46 = vld [vmem:[%s1276_s1 + $0x3b0] sm:$0xff] }
  0x26   :  { %312 = vmatpush.msrb.mxu0 %v123_v4  ;;  %380 = vmatpush.msrb.mxu3 %v172_v9  ;;  %v146_v47 = vld [vmem:[%s1276_s1 + $0x320] sm:$0xff]  ;;  %v112_v48 = vld [vmem:[%s1276_s1 + $0x210] sm:$0xff]  ;;  %v163_v50 = vld [vmem:[%s1276_s1 + $0x3a8] sm:$0xff] }
  0x27   :  { %358 = vmatpush.msrb.mxu2 %v155_v7  ;;  %334 = vmatpush.msrb.mxu1 %v140_v10  ;;  %v132_v49 = vld [vmem:[%s1276_s1 + $0x2b0] sm:$0xff]  ;;  %v38_v51 = vld [vmem:[%s1275_s0 + $0x60] sm:$0xff]  ;;  %v111_v52 = vld [vmem:[%s1276_s1 + $0x208] sm:$0xff] }
  0x28   :  { %313 = vmatpush.msrb.mxu0 %v122_v8  ;;  %381 = vmatpush.msrb.mxu3 %v171_v13  ;;  %v131_v53 = vld [vmem:[%s1276_s1 + $0x2a8] sm:$0xff]  ;;  %v145_v54 = vld [vmem:[%s1276_s1 + $0x318] sm:$0xff]  ;;  %v162_v55 = vld [vmem:[%s1276_s1 + $0x3a0] sm:$0xff] }
  0x29   :  { %359 = vmatpush.msrb.mxu2 %v154_v11  ;;  %335 = vmatpush.msrb.mxu1 %v139_v14  ;;  %v36_v56 = vld [vmem:[%s1275_s0 + $0x50] sm:$0xff]  ;;  %v39_v57 = vld [vmem:[%s1275_s0 + $0x68] sm:$0xff]  ;;  %v110_v58 = vld [vmem:[%s1276_s1 + $0x200] sm:$0xff] }
  0x2a   :  { %314 = vmatpush.msrb.mxu0 %v121_v12  ;;  %382 = vmatpush.msrb.mxu3 %v170_v17  ;;  %v130_v59 = vld [vmem:[%s1276_s1 + $0x2a0] sm:$0xff]  ;;  %v144_v60 = vld [vmem:[%s1276_s1 + $0x310] sm:$0xff]  ;;  %v161_v61 = vld [vmem:[%s1276_s1 + $0x398] sm:$0xff] }
  0x2b   :  { %360 = vmatpush.msrb.mxu2 %v153_v15  ;;  %336 = vmatpush.msrb.mxu1 %v138_v18  ;;  %v189_v62 = vld [vmem:[%s1276_s1 + $0x478] sm:$0xff]  ;;  %v143_v1 = vld [vmem:[%s1276_s1 + $0x308] sm:$0xff]  ;;  %v160_v2 = vld [vmem:[%s1276_s1 + $0x390] sm:$0xff] }
  0x2c   :  { %315 = vmatpush.msrb.mxu0 %v120_v16  ;;  %383 = vmatpush.msrb.mxu3 %v169_v21  ;;  %v37_v63 = vld [vmem:[%s1275_s0 + $0x58] sm:$0xff]  ;;  %v188_v3 = vld [vmem:[%s1276_s1 + $0x470] sm:$0xff]  ;;  %v142_v5 = vld [vmem:[%s1276_s1 + $0x300] sm:$0xff] }
  0x2d   :  { %361 = vmatpush.msrb.mxu2 %v152_v19  ;;  %337 = vmatpush.msrb.mxu1 %v137_v22  ;;  %v129_v0 = vld [vmem:[%s1276_s1 + $0x298] sm:$0xff]  ;;  %v128_v4 = vld [vmem:[%s1276_s1 + $0x290] sm:$0xff]  ;;  %v159_v6 = vld [vmem:[%s1276_s1 + $0x388] sm:$0xff] }
  0x2e   :  { %316 = vmatpush.msrb.mxu0 %v119_v20  ;;  %384 = vmatpush.msrb.mxu3 %v168_v25  ;;  %v187_v7 = vld [vmem:[%s1276_s1 + $0x468] sm:$0xff]  ;;  %v32_v9 = vld [vmem:[%s1275_s0 + $0x30] sm:$0xff]  ;;  %v158_v10 = vld [vmem:[%s1276_s1 + $0x380] sm:$0xff] }
  0x2f   :  { %362 = vmatpush.msrb.mxu2 %v151_v23  ;;  %338 = vmatpush.msrb.mxu1 %v136_v26  ;;  %v127_v8 = vld [vmem:[%s1276_s1 + $0x288] sm:$0xff]  ;;  %v186_v11 = vld [vmem:[%s1276_s1 + $0x460] sm:$0xff]  ;;  %v33_v14 = vld [vmem:[%s1275_s0 + $0x38] sm:$0xff] }
  0x30   :  { %317 = vmatpush.msrb.mxu0 %v118_v24  ;;  %385 = vmatpush.msrb.mxu3 %v167_v29  ;;  %v30_v12 = vld [vmem:[%s1275_s0 + $0x20] sm:$0xff]  ;;  %v185_v15 = vld [vmem:[%s1276_s1 + $0x458] sm:$0xff]  ;;  %v31_v17 = vld [vmem:[%s1275_s0 + $0x28] sm:$0xff] }
  0x31   :  { %363 = vmatpush.msrb.mxu2 %v150_v27  ;;  %339 = vmatpush.msrb.mxu1 %v135_v31  ;;  %v126_v13 = vld [vmem:[%s1276_s1 + $0x280] sm:$0xff]  ;;  %v184_v18 = vld [vmem:[%s1276_s1 + $0x450] sm:$0xff]  ;;  %v201_v19 = vld [vmem:[%s1276_s1 + $0x4d8] sm:$0xff] }
  0x32   :  { %318 = vmatpush.msrb.mxu0 %v117_v28  ;;  %280 = vmatmul.f32.vlgmr.msra.gmra.mxu2 %v28_v30  ;;  %v202_v16 = vld [vmem:[%s1276_s1 + $0x4e0] sm:$0x3]  ;;  %v183_v20 = vld [vmem:[%s1276_s1 + $0x448] sm:$0xff]  ;;  %v200_v21 = vld [vmem:[%s1276_s1 + $0x4d0] sm:$0xff] }
  0x33   :  { %364 = vmatpush.msrb.mxu2 %v149_v33  ;;  %386 = vmatpush.msrb.mxu3 %v166_v34  ;;  %v42_v22 = vld [vmem:[%s1275_s0 + $0x80] sm:$0xff]  ;;  %v199_v24 = vld [vmem:[%s1276_s1 + $0x4c8] sm:$0xff]  ;;  %v40_v25 = vld [vmem:[%s1275_s0 + $0x70] sm:$0xff] }
  0x34   :  { %319 = vmatpush.msrb.mxu0 %v116_v32  ;;  %303 = vmatmul.f32.vlgmr.msra.gmra.mxu3 %v29_v37  ;;  %v182_v23 = vld [vmem:[%s1276_s1 + $0x440] sm:$0xff]  ;;  %v43_v26 = vld [vmem:[%s1275_s0 + $0x88] sm:$0xff]  ;;  %v181_v27 = vld [vmem:[%s1276_s1 + $0x438] sm:$0xff] }
  0x35   :  { %234 = vmatmul.f32.vlgmr.msra.gmra.mxu0 %v26_v35  ;;  %340 = vmatpush.msrb.mxu1 %v134_v38  ;;  %v198_v28 = vld [vmem:[%s1276_s1 + $0x4c0] sm:$0xff]  ;;  %v41_v29 = vld [vmem:[%s1275_s0 + $0x78] sm:$0xff]  ;;  %v180_v30 = vld [vmem:[%s1276_s1 + $0x430] sm:$0xff] }
  0x36   :  { %320 = vmatpush.msrb.mxu0 %v115_v36  ;;  %365 = vmatpush.msrb.mxu2 %v148_v39  ;;  %v197_v31 = vld [vmem:[%s1276_s1 + $0x4b8] sm:$0xff]  ;;  %v179_v32 = vld [vmem:[%s1276_s1 + $0x428] sm:$0xff]  ;;  %v196_v33 = vld [vmem:[%s1276_s1 + $0x4b0] sm:$0xff] }
  0x37   :  { %387 = vmatpush.msrb.mxu3 %v165_v41  ;;  %257 = vmatmul.f32.vlgmr.msra.gmra.mxu1 %v27_v42  ;;  %v178_v34 = vld [vmem:[%s1276_s1 + $0x420] sm:$0xff]  ;;  %v195_v35 = vld [vmem:[%s1276_s1 + $0x4a8] sm:$0xff]  ;;  %v177_v36 = vld [vmem:[%s1276_s1 + $0x418] sm:$0xff] }
  0x38   :  { %321 = vmatpush.msrb.mxu0 %v114_v40  ;;  %366 = vmatpush.msrb.mxu2 %v147_v43  ;;  %v194_v37 = vld [vmem:[%s1276_s1 + $0x4a0] sm:$0xff]  ;;  %v176_v38 = vld [vmem:[%s1276_s1 + $0x410] sm:$0xff]  ;;  %v193_v39 = vld [vmem:[%s1276_s1 + $0x498] sm:$0xff] }
  0x39   :  { %341 = vmatpush.msrb.mxu1 %v133_v45  ;;  %388 = vmatpush.msrb.mxu3 %v164_v46  ;;  %v175_v40 = vld [vmem:[%s1276_s1 + $0x408] sm:$0xff]  ;;  %v192_v41 = vld [vmem:[%s1276_s1 + $0x490] sm:$0xff]  ;;  %v174_v42 = vld [vmem:[%s1276_s1 + $0x400] sm:$0xff] }
  0x3a   :  { %322 = vmatpush.msrb.mxu0 %v113_v44  ;;  %367 = vmatpush.msrb.mxu2 %v146_v47  ;;  %v191_v43 = vld [vmem:[%s1276_s1 + $0x488] sm:$0xff]  ;;  %v34_v44 = vld [vmem:[%s1275_s0 + $0x40] sm:$0xff]  ;;  %v44_v47 = vld [vmem:[%s1275_s0 + $0x90] sm:$0xff] }
  0x3b   :  { %342 = vmatpush.msrb.mxu1 %v132_v49  ;;  %389 = vmatpush.msrb.mxu3 %v163_v50  ;;  %v190_v45 = vld [vmem:[%s1276_s1 + $0x480] sm:$0xff]  ;;  %v35_v46 = vld [vmem:[%s1275_s0 + $0x48] sm:$0xff]  ;;  %v461_v50 = vld [vmem:[%s1278_s3 + $0x58] sm:$0xff] }
  0x3c   :  { %323 = vmatpush.msrb.mxu0 %v112_v48  ;;  %283 = vmatmul.f32.gmra.mxu2 %v38_v51  ;;  %v45_v48 = vld [vmem:[%s1275_s0 + $0x98] sm:$0xff]  ;;  %v462_v49 = vld [vmem:[%s1278_s3 + $0x60] sm:$0xf]  ;;  %v460_v51 = vld [vmem:[%s1278_s3 + $0x50] sm:$0xff] }
  0x3d   :  { %343 = vmatpush.msrb.mxu1 %v131_v53  ;;  %368 = vmatpush.msrb.mxu2 %v145_v54  ;;  %v458_v53 = vld [vmem:[%s1278_s3 + $0x40] sm:$0xff]  ;;  %v457_v54 = vld [vmem:[%s1278_s3 + $0x38] sm:$0xff] }
  0x3e   :  { %324 = vmatpush.msrb.mxu0 %v111_v52  ;;  %390 = vmatpush.msrb.mxu3 %v162_v55  ;;  %v459_v52 = vld [vmem:[%s1278_s3 + $0x48] sm:$0xff]  ;;  %v456_v55 = vld [vmem:[%s1278_s3 + $0x30] sm:$0xff] }
  0x3f   :  { %237 = vmatmul.f32.gmra.mxu0 %v36_v56  ;;  %306 = vmatmul.f32.gmra.mxu3 %v39_v57  ;;  %v455_v57 = vld [vmem:[%s1278_s3 + $0x28] sm:$0xff] }
  0x40   :  { %325 = vmatpush.msrb.mxu0 %v110_v58  ;;  %344 = vmatpush.msrb.mxu1 %v130_v59  ;;  %v454_v58 = vld [vmem:[%s1278_s3 + $0x20] sm:$0xff] }
  0x41   :  { %369 = vmatpush.msrb.mxu2 %v144_v60  ;;  %391 = vmatpush.msrb.mxu3 %v161_v61  ;;  %v605_v60 = vld [vmem:[%s1277_s2] ss:$0 sm:$0xff]  ;;  %v453_v61 = vld [vmem:[%s1278_s3 + $0x18] sm:$0xff] }
  0x42   :  { %402 = vmatpush.msra.mxu0 %v189_v62  ;;  %260 = vmatmul.f32.gmra.mxu1 %v37_v63  ;;  %v452_v63 = vld [vmem:[%s1278_s3 + $0x10] sm:$0xff] }
  0x43   :  { %345 = vmatpush.msrb.mxu1 %v129_v0  ;;  %370 = vmatpush.msrb.mxu2 %v143_v1 }
  0x44   :  { %392 = vmatpush.msrb.mxu3 %v160_v2  ;;  %403 = vmatpush.msra.mxu0 %v188_v3  ;;  %v451_v2 = vld [vmem:[%s1278_s3 + $0x8] sm:$0xff] }
  0x45   :  { %346 = vmatpush.msrb.mxu1 %v128_v4  ;;  %371 = vmatpush.msrb.mxu2 %v142_v5  ;;  %v450_v4 = vld [vmem:[%s1278_s3] sm:$0xff] }
  0x46   :  { %393 = vmatpush.msrb.mxu3 %v159_v6  ;;  %404 = vmatpush.msra.mxu0 %v187_v7 }
  0x47   :  { %347 = vmatpush.msrb.mxu1 %v127_v8  ;;  %372 = vmatmul.f32.vlgmr.msrb.gmra.mxu2 %v32_v9 }
  0x48   :  { %394 = vmatpush.msrb.mxu3 %v158_v10  ;;  %405 = vmatpush.msra.mxu0 %v186_v11 }
  0x49   :  { %326 = vmatmul.f32.vlgmr.msrb.gmra.mxu0 %v30_v12  ;;  %348 = vmatpush.msrb.mxu1 %v126_v13 }
  0x4a   :  { %395 = vmatmul.f32.vlgmr.msrb.gmra.mxu3 %v33_v14  ;;  %406 = vmatpush.msra.mxu0 %v185_v15  ;;  %v515_v14 = vld [vmem:[%s1280_s5 + $0x60] sm:$0xf]  ;;  %v514_v15 = vld [vmem:[%s1280_s5 + $0x58] sm:$0xff] }
  0x4b   :  { %596 = vmatpush.msk.msra.mxu1 %vm214_vm0, %v202_v16  ;;  %599 = vmatpush.msk.msra.mxu2 %vm474_vm2, %v462_v49 }
  0x4c   :  { %349 = vmatmul.f32.vlgmr.msrb.gmra.mxu1 %v31_v17  ;;  %407 = vmatpush.msra.mxu0 %v184_v18  ;;  %v513_v17 = vld [vmem:[%s1280_s5 + $0x50] sm:$0xff] }
  0x4d   :  { %429 = vmatpush.msra.mxu1 %v201_v19  ;;  %482 = vmatpush.msra.mxu2 %v461_v50 }
  0x4e   :  { %408 = vmatpush.msra.mxu0 %v183_v20  ;;  %602 = vmatpush.msk.msra.mxu3 %vm474_vm2, %v515_v14  ;;  %v512_v20 = vld [vmem:[%s1280_s5 + $0x48] sm:$0xff] }
  0x4f   :  { %430 = vmatpush.msra.mxu1 %v200_v21  ;;  %375 = vmatmul.f32.gmra.mxu2 %v42_v22  ;;  %v511_v22 = vld [vmem:[%s1280_s5 + $0x40] sm:$0xff] }
  0x50   :  { %409 = vmatpush.msra.mxu0 %v182_v23  ;;  %483 = vmatpush.msra.mxu2 %v460_v51  ;;  %v505_v51 = vld [vmem:[%s1280_s5 + $0x10] sm:$0xff] }
  0x51   :  { %431 = vmatpush.msra.mxu1 %v199_v24  ;;  %329 = vmatmul.f32.gmra.mxu0 %v40_v25 }
  0x52   :  { %398 = vmatmul.f32.gmra.mxu3 %v43_v26  ;;  %410 = vmatpush.msra.mxu0 %v181_v27  ;;  %v510_v26 = vld [vmem:[%s1280_s5 + $0x38] sm:$0xff] }
  0x53   :  { %432 = vmatpush.msra.mxu1 %v198_v28  ;;  %484 = vmatpush.msra.mxu2 %v459_v52  ;;  %v509_v28 = vld [vmem:[%s1280_s5 + $0x30] sm:$0xff]  ;;  %v504_v52 = vld [vmem:[%s1280_s5 + $0x8] sm:$0xff] }
  0x54   :  { %352 = vmatmul.f32.gmra.mxu1 %v41_v29  ;;  %411 = vmatpush.msra.mxu0 %v180_v30 }
  0x55   :  { %433 = vmatpush.msra.mxu1 %v197_v31  ;;  %485 = vmatpush.msra.mxu2 %v458_v53  ;;  %v503_v53 = vld [vmem:[%s1280_s5] sm:$0xff] }
  0x56   :  { %412 = vmatpush.msra.mxu0 %v179_v32  ;;  %533 = vmatpush.msra.mxu3 %v514_v15  ;;  %v508_v32 = vld [vmem:[%s1280_s5 + $0x28] sm:$0xff] }
  0x57   :  { %434 = vmatpush.msra.mxu1 %v196_v33  ;;  %486 = vmatpush.msra.mxu2 %v457_v54  ;;  %v507_v33 = vld [vmem:[%s1280_s5 + $0x20] sm:$0xff] }
  0x58   :  { %413 = vmatpush.msra.mxu0 %v178_v34  ;;  %534 = vmatpush.msra.mxu3 %v513_v17  ;;  %v606_v54 = vld [vmem:[%s1279_s4] ss:$0 sm:$0xff] }
  0x59   :  { %435 = vmatpush.msra.mxu1 %v195_v35  ;;  %487 = vmatpush.msra.mxu2 %v456_v55 }
  0x5a   :  { %414 = vmatpush.msra.mxu0 %v177_v36  ;;  %535 = vmatpush.msra.mxu3 %v512_v20 }
  0x5b   :  { %436 = vmatpush.msra.mxu1 %v194_v37  ;;  %488 = vmatpush.msra.mxu2 %v455_v57 }
  0x5c   :  { %415 = vmatpush.msra.mxu0 %v176_v38  ;;  %536 = vmatpush.msra.mxu3 %v511_v22  ;;  %v506_v38 = vld [vmem:[%s1280_s5 + $0x18] sm:$0xff] }
  0x5d   :  { %437 = vmatpush.msra.mxu1 %v193_v39  ;;  %489 = vmatpush.msra.mxu2 %v454_v58 }
  0x5e   :  { %416 = vmatpush.msra.mxu0 %v175_v40  ;;  %537 = vmatpush.msra.mxu3 %v510_v26 }
  0x5f   :  { %438 = vmatpush.msra.mxu1 %v192_v41  ;;  %490 = vmatpush.msra.mxu2 %v453_v61  ;;  %v607_v61 = vld [vmem:[%s1281_s6] ss:$0 sm:$0xff] }
  0x60   :  { %417 = vmatpush.msra.mxu0 %v174_v42  ;;  %538 = vmatpush.msra.mxu3 %v509_v28 }
  0x61   :  { %439 = vmatpush.msra.mxu1 %v191_v43  ;;  %418 = vmatmul.f32.vlgmr.msra.gmra.mxu0 %v34_v44 }
  0x62   :  { %491 = vmatpush.msra.mxu2 %v452_v63  ;;  %539 = vmatpush.msra.mxu3 %v508_v32 }
  0x63   :  { %440 = vmatpush.msra.mxu1 %v190_v45 }
  0x64   :  { %597 = vmatmul.msk.f32.vlgmr.msra.gmra.mxu1 %vm207_vm1, %v35_v46  ;;  %492 = vmatpush.msra.mxu2 %v451_v2 }
  0x65   :  { %540 = vmatpush.msra.mxu3 %v507_v33 }
  0x66   :  { %493 = vmatpush.msra.mxu2 %v450_v4 }
  0x67   :  { %541 = vmatpush.msra.mxu3 %v506_v38 }
  0x69   :  { %421 = vmatmul.f32.gmra.mxu0 %v44_v47  ;;  %542 = vmatpush.msra.mxu3 %v505_v51 }
  0x6b   :  { %543 = vmatpush.msra.mxu3 %v504_v52 }
  0x6c   :  { %598 = vmatmul.msk.f32.gmra.mxu1 %vm207_vm1, %v45_v48 }
  0x6d   :  { %544 = vmatpush.msra.mxu3 %v503_v53 }
  0xb2   :  { %v235_v56 = vpop.f32.mrf.mxu0 }
  0xb3   :  { %v236_v0 = vadd.f32 %v605_v60, %v235_v56 }
  0xb4   :  { %v258_v59 = vpop.f32.mrf.mxu1 }
  0xb5   :  { %v281_v62 = vpop.f32.mrf.mxu2  ;;  %v259_v5 = vadd.f32 %v258_v59, %v236_v0 }
  0xb7   :  { %v304_v3 = vpop.f32.mrf.mxu3  ;;  %v282_v7 = vadd.f32 %v281_v62, %v259_v5 }
  0xb9   :  { %v305_v11 = vadd.f32 %v304_v3, %v282_v7 }
  0xbc   :  { %v238_v1 = vpop.f32.mrf.mxu0 }
  0xbd   :  { %v239_v8 = vadd.f32 %v605_v60, %v238_v1 }
  0xbf   :  { %v261_v6 = vpop.f32.mrf.mxu1  ;;  %v284_v9 = vpop.f32.mrf.mxu2 }
  0xc0   :  { %v262_v12 = vadd.f32 %v261_v6, %v239_v8 }
  0xc2   :  { %v307_v13 = vpop.f32.mrf.mxu3  ;;  %v285_v18 = vadd.f32 %v284_v9, %v262_v12 }
  0xc4   :  { %v308_v23 = vadd.f32 %v307_v13, %v285_v18 }
  0xc6   :  { %v327_v10 = vpop.f32.mrf.mxu0 }
  0xc7   :  { %v328_v19 = vadd.f32 %v327_v10, %v305_v11 }
  0xc9   :  { %v350_v16 = vpop.f32.mrf.mxu1 }
  0xca   :  { %v373_v21 = vpop.f32.mrf.mxu2  ;;  %v351_v24 = vadd.f32 %v350_v16, %v328_v19 }
  0xcc   :  { %v374_v29 = vadd.f32 %v373_v21, %v351_v24 }
  0xcd   :  { %v396_v27 = vpop.f32.mrf.mxu3 }
  0xce   :  { %v330_v25 = vpop.f32.mrf.mxu0  ;;  %v397_v34 = vadd.f32 %v396_v27, %v374_v29 }
  0xcf   :  { %v331_v30 = vadd.f32 %v330_v25, %v308_v23 }
  0xd1   :  { %v353_v31 = vpop.f32.mrf.mxu1 }
  0xd2   :  { %v354_v35 = vadd.f32 %v353_v31, %v331_v30  ;;  %v376_v36 = vpop.f32.mrf.mxu2 }
  0xd4   :  { %v377_v40 = vadd.f32 %v376_v36, %v354_v35 }
  0xd5   :  { %v399_v42 = vpop.f32.mrf.mxu3 }
  0xd6   :  { %v400_v45 = vadd.f32 %v399_v42, %v377_v40 }
  0xde   :  { %v419_v37 = vpop.f32.mrf.mxu0 }
  0xdf   :  { %v420_v39 = vadd.f32 %v419_v37, %v397_v34 }
  0xe1   :  { %v442_v41 = vpop.f32.mrf.mxu1 }
  0xe2   :  { %v443_v43 = vadd.f32 %v442_v41, %v420_v39 }
  0xe4   :  { %v448_v44 = vmax.f32 %v443_v43, 0.0 }
  0xe6   :  { %600 = vmatmul.msk.f32.vlgmr.msra.gmra.mxu2 %vm467_vm3, %v448_v44  ;;  %v422_v46 = vpop.f32.mrf.mxu0 }
  0xe7   :  { %v423_v47 = vadd.f32 %v422_v46, %v400_v45 }
  0xe9   :  { %v445_v48 = vpop.f32.mrf.mxu1 }
  0xea   :  { %v446_v49 = vadd.f32 %v445_v48, %v423_v47 }
  0xec   :  { %v449_v50 = vmax.f32 %v446_v49, 0.0 }
  0xee   :  { %601 = vmatmul.msk.f32.gmra.mxu2 %vm467_vm3, %v449_v50 }
 0x169   :  { %v495_v55 = vpop.f32.mrf.mxu2 }
 0x16a   :  { %v496_v56 = vadd.f32 %v606_v54, %v495_v55 }
 0x16c   :  { %v501_v57 = vmax.f32 %v496_v56, 0.0 }
 0x16e   :  { %603 = vmatmul.msk.f32.vlgmr.msra.gmra.mxu3 %vm467_vm3, %v501_v57 }
 0x171   :  { %v498_v58 = vpop.f32.mrf.mxu2 }
 0x172   :  { %v499_v59 = vadd.f32 %v606_v54, %v498_v58 }
 0x174   :  { %v502_v60 = vmax.f32 %v499_v59, 0.0 }
 0x176   :  { %604 = vmatmul.msk.f32.gmra.mxu3 %vm467_vm3, %v502_v60 }
 0x1f1   :  { %v546_v62 = vpop.f32.mrf.mxu3 }
 0x1f2   :  { %v547_v63 = vadd.f32 %v607_v61, %v546_v62 }
 0x1f4   :  { %553 = vst.msk [vmem:[#allocation2] sm:$0xff] %vm552_vm4, %v547_v63 }
 0x1f9   :  { %v549_v0 = vpop.f32.mrf.mxu3 }
 0x1fb   :  { %v585_v1 = vld [vmem:[#allocation2] sm:$0xff] }
 0x1fc   :  { %586 = vst [vmem:[%s1282_s7] sm:$0xff] %v585_v1 }

</bundles_post_ra>
